<compile_context>
chip_gen: v7x
topology: tpu7x:2x2x1
jax: 0.10.0
libtpu: 0.0.40
codegen_flags: <defaults>
</compile_context>

<pallas_src>
import functools

import jax
import jax.numpy as jnp
from jax.experimental import pallas as pl
from jax.experimental.pallas import tpu as pltpu


_INV_SQRT2 = 0.7071067811865476


def _gelu_f32(x, approximate=False):
    # PyTorch F.gelu default is the exact erf-based GELU (computed here in f32).
    if approximate:
        return jax.nn.gelu(x, approximate=True)
    return 0.5 * x * (1.0 + jax.lax.erf(x * _INV_SQRT2))


def _largest_divisor_leq(n, target, step):
    """Largest multiple of `step` that divides n and is <= target, or None."""
    t = min(target, n)
    t -= t % step
    while t >= step:
        if n % t == 0:
            return t
        t -= step
    return None


def _fused_mlp_chunks(x_ref, w1_ref, b1_ref, w2_ref, n_chunks, hc, approximate_gelu):
    """fc1 -> GELU -> fc2 over `n_chunks` hidden sub-chunks of width hc.

    Splitting the hidden dim breaks the serial fc1->GELU->fc2 dependency chain so
    the scheduler can co-issue chunk k+1's fc1 matmul (MXU) with chunk k's GELU +
    fc2-accumulate (VALU/EUP).  Returns the f32 (tm, D_out) partial result
    (fc2 bias NOT included).
    """
    mxu_dtype = w1_ref.dtype
    x = x_ref[...].astype(mxu_dtype)          # in-kernel cast (no wrapper HBM pass)
    acc = None
    for c in range(n_chunks):                 # static python loop, fully unrolled
        lo, hi = c * hc, (c + 1) * hc
        h = jnp.dot(x, w1_ref[:, lo:hi], preferred_element_type=jnp.float32)
        h = _gelu_f32(h + b1_ref[:, lo:hi], approximate_gelu)
        # drop = 0.0 -> dropout is identity (no-op)
        p = jnp.dot(h.astype(mxu_dtype), w2_ref[lo:hi, :],
                    preferred_element_type=jnp.float32)
        acc = p if acc is None else acc + p
    return acc


def _mlp_kernel_resident(x_ref, w1_ref, b1_ref, w2_ref, b2_ref, o_ref,
                         *, n_chunks, hc, approximate_gelu):
    # Weights are VMEM-resident (constant block index); one fused step per row tile,
    # no cross-step accumulator scratch needed.
    acc = _fused_mlp_chunks(x_ref, w1_ref, b1_ref, w2_ref, n_chunks, hc,
                            approximate_gelu)
    o_ref[...] = (acc + b2_ref[...]).astype(o_ref.dtype)


def _mlp_kernel_htiled(x_ref, w1_ref, b1_ref, w2_ref, b2_ref, o_ref, acc_ref,
                       *, n_chunks, hc, approximate_gelu):
    # H-tiled fallback (weights too big for VMEM residency): accumulate partial fc2
    # contractions over the hidden-tile grid axis in an f32 VMEM scratch.
    h_idx = pl.program_id(1)

    @pl.when(h_idx == 0)
    def _():
        acc_ref[...] = jnp.zeros_like(acc_ref)

    acc_ref[...] += _fused_mlp_chunks(x_ref, w1_ref, b1_ref, w2_ref, n_chunks, hc,
                                      approximate_gelu)

    @pl.when(h_idx == pl.num_programs(1) - 1)
    def _():
        o_ref[...] = (acc_ref[...] + b2_ref[...]).astype(o_ref.dtype)


def mlp_pallas(x, w1, b1, w2, b2, *, tm=512, th=512, out_dtype=None,
               approximate_gelu=False, vmem_budget_bytes=None):
    """ViT Mlp forward: fc2(GELU(fc1(x))), drop=0.0 (dropout == identity).

    x : [B, N, D_in] (any float dtype; cast to the MXU dtype inside the kernel)
    w1: [D_in, H]  (= fc1.weight.T)   b1: [H]     (fc1.bias)
    w2: [H, D_out] (= fc2.weight.T)   b2: [D_out] (fc2.bias)

    Weights should be stored persistently in the desired MXU dtype (e.g. bf16,
    cast once at init) -- this wrapper does not re-cast them per call.
    Returns [B, N, D_out] in `out_dtype` (default x.dtype).
    """
    B, N, D_in = x.shape
    H = w1.shape[1]
    D_out = w2.shape[1]
    M = B * N
    out_dtype = out_dtype or x.dtype

    mxu_dtype = w1.dtype
    if w2.dtype != mxu_dtype:
        w2 = w2.astype(mxu_dtype)
    b1_2d = b1.reshape(1, H).astype(jnp.float32)
    b2_2d = b2.reshape(1, D_out).astype(jnp.float32)

    # ---- row tile: prefer divisors of M (no pad copy), >=2 tiles when cheap.
    x2d = x.reshape(M, D_in)
    if M <= tm:
        # A single row tile would idle one v7x TensorCore; split in two when cheap.
        tm = M // 2 if (M >= 16 and M % 16 == 0) else M
        M_pad = M
    else:
        cand = _largest_divisor_leq(M, tm, 8)
        if cand is not None and cand >= 64:
            tm, M_pad = cand, M
        else:
            # Last resort: pad M up to a multiple of tm.  Padded rows flow through
            # bias+GELU+fc2 producing garbage that is sliced off below; never
            # reduce over the padded output.
            M_pad = pl.cdiv(M, tm) * tm
            x2d = jnp.pad(x2d, ((0, M_pad - M), (0, 0)))
    num_row_tiles = M_pad // tm

    # ---- per-generation VMEM budget (v7x has 64 MiB/TC; v5e/v6e have 128 MiB).
    try:
        vmem_cap = int(pltpu.get_tpu_info().vmem_capacity_bytes)
    except Exception:
        vmem_cap = 64 * 1024 * 1024            # conservative (v7x-sized) fallback
    if vmem_budget_bytes is None:
        vmem_budget_bytes = min(vmem_cap // 2, 64 * 1024 * 1024)

    wbytes = jnp.dtype(mxu_dtype).itemsize
    xbytes = jnp.dtype(x.dtype).itemsize
    obytes = jnp.dtype(out_dtype).itemsize
    est_resident = (2 * (D_in * H + H * D_out) * wbytes    # double-buffered weights
                    + 2 * tm * D_in * xbytes               # x tiles
                    + 2 * tm * D_out * obytes              # out tiles
                    + 2 * (H + D_out) * 4)                 # biases
    use_resident = est_resident <= vmem_budget_bytes

    def _chunks(t):
        if t % 512 == 0:
            return 4, t // 4
        if t % 256 == 0:
            return 2, t // 2
        return 1, t

    if use_resident:
        # Weights fetched from HBM exactly once (constant block index) and kept
        # resident in VMEM across every row tile.
        n_chunks, hc = _chunks(H)
        kernel = functools.partial(_mlp_kernel_resident, n_chunks=n_chunks, hc=hc,
                                   approximate_gelu=approximate_gelu)
        grid_spec = pltpu.PrefetchScalarGridSpec(
            num_scalar_prefetch=0,
            grid=(num_row_tiles,),
            in_specs=[
                pl.BlockSpec((tm, D_in), lambda i: (i, 0)),      # x row tile
                pl.BlockSpec((D_in, H), lambda i: (0, 0)),       # w1 (resident)
                pl.BlockSpec((1, H), lambda i: (0, 0)),          # b1 (resident)
                pl.BlockSpec((H, D_out), lambda i: (0, 0)),      # w2 (resident)
                pl.BlockSpec((1, D_out), lambda i: (0, 0)),      # b2 (resident)
            ],
            out_specs=pl.BlockSpec((tm, D_out), lambda i: (i, 0)),
        )
        dim_sem = ("parallel",)
        est_vmem = est_resident
    else:
        # H-tiled fallback: stream hidden tiles of the weights per row tile.
        th_eff = _largest_divisor_leq(H, th, 128) or H
        n_chunks, hc = _chunks(th_eff)
        kernel = functools.partial(_mlp_kernel_htiled, n_chunks=n_chunks, hc=hc,
                                   approximate_gelu=approximate_gelu)
        grid_spec = pltpu.PrefetchScalarGridSpec(
            num_scalar_prefetch=0,
            grid=(num_row_tiles, H // th_eff),
            in_specs=[
                pl.BlockSpec((tm, D_in), lambda i, h: (i, 0)),     # x row tile
                pl.BlockSpec((D_in, th_eff), lambda i, h: (0, h)), # w1 col tile
                pl.BlockSpec((1, th_eff), lambda i, h: (0, h)),    # b1 tile
                pl.BlockSpec((th_eff, D_out), lambda i, h: (h, 0)),# w2 row tile
                pl.BlockSpec((1, D_out), lambda i, h: (0, 0)),     # b2
            ],
            out_specs=pl.BlockSpec((tm, D_out), lambda i, h: (i, 0)),
            scratch_shapes=[pltpu.VMEM((tm, D_out), jnp.float32)],
        )
        dim_sem = ("parallel", "arbitrary")
        est_vmem = (2 * tm * D_in * xbytes
                    + 2 * (D_in * th_eff + th_eff * D_out) * wbytes
                    + 2 * tm * D_out * obytes
                    + tm * D_out * 4
                    + 2 * (H + D_out) * 4)

    vmem_limit = int(min(max(est_vmem + est_vmem // 4 + (2 << 20), 32 << 20),
                         max(vmem_cap - (8 << 20), 32 << 20)))

    cost = pl.CostEstimate(
        flops=2 * M_pad * (D_in * H + H * D_out),
        transcendentals=M_pad * H,                 # erf per hidden activation
        bytes_accessed=int(M_pad * D_in * xbytes
                           + (D_in * H + H * D_out) * wbytes
                           + (H + D_out) * 4
                           + M_pad * D_out * obytes),
    )

    out2d = pl.pallas_call(
        kernel,
        out_shape=jax.ShapeDtypeStruct((M_pad, D_out), out_dtype),
        grid_spec=grid_spec,
        compiler_params=pltpu.CompilerParams(
            dimension_semantics=dim_sem,
            vmem_limit_bytes=vmem_limit,
        ),
        cost_estimate=cost,
    )(x2d, w1, b1_2d, w2, b2_2d)

    if M_pad != M:
        out2d = out2d[:M]
    return out2d.reshape(B, N, D_out)


def mlp_reference(x, w1, b1, w2, b2, *, mxu_dtype=jnp.bfloat16):
    """Pure-JAX reference mirroring the kernel precision (bf16 MXU, f32 acc)."""
    xc = x.astype(mxu_dtype)
    h = jnp.einsum("bnd,dh->bnh", xc, w1.astype(mxu_dtype),
                   preferred_element_type=jnp.float32) + b1.astype(jnp.float32)
    h = _gelu_f32(h)
    y = jnp.einsum("bnh,ho->bno", h.astype(mxu_dtype), w2.astype(mxu_dtype),
                   preferred_element_type=jnp.float32) + b2.astype(jnp.float32)
    return y.astype(x.dtype)


if __name__ == "__main__":
    # Small but lane-dense shapes (feature dims multiple of 128).
    B, N = 2, 8                      # batch, tokens
    D_in, H, D_out = 128, 256, 128   # in_features, hidden_features, out_features

    key = jax.random.PRNGKey(0)
    kx, k1, kb1, k2, kb2 = jax.random.split(key, 5)

    x = jax.random.normal(kx, (B, N, D_in), dtype=jnp.float32)

    # Deterministic parameter init (uniform, roughly matching nn.Linear scale).
    lim1 = 1.0 / float(D_in) ** 0.5
    lim2 = 1.0 / float(H) ** 0.5
    w1 = jax.random.uniform(k1, (D_in, H), minval=-lim1, maxval=lim1,
                            dtype=jnp.float32)   # fc1.weight.T
    b1 = jax.random.uniform(kb1, (H,), minval=-lim1, maxval=lim1,
                            dtype=jnp.float32)   # fc1.bias
    w2 = jax.random.uniform(k2, (H, D_out), minval=-lim2, maxval=lim2,
                            dtype=jnp.float32)   # fc2.weight.T
    b2 = jax.random.uniform(kb2, (D_out,), minval=-lim2, maxval=lim2,
                            dtype=jnp.float32)   # fc2.bias

    # Cast weights to bf16 ONCE ("at init") to mirror persistent bf16 param
    # storage; the wrapper performs no per-call weight casts.
    w1_p = w1.astype(jnp.bfloat16)
    w2_p = w2.astype(jnp.bfloat16)

    out = mlp_pallas(x, w1_p, b1, w2_p, b2)
    out = jax.block_until_ready(out)

    ref = mlp_reference(x, w1, b1, w2, b2)
    assert out.shape == (B, N, D_out)
    assert jnp.allclose(out, ref, atol=2e-2, rtol=2e-2), "mismatch vs reference"

    print("KERNEL_OK")
</pallas_src>

<mosaic_0001>
module attributes {stable_mosaic.version = 11 : i64} {
  func.func @_mlp_kernel_resident(%arg0: i32, %arg1: memref<8x128xf32, #tpu.memory_space<vmem>>, %arg2: memref<128x256xbf16, #tpu.memory_space<vmem>>, %arg3: memref<1x256xf32, #tpu.memory_space<vmem>>, %arg4: memref<256x128xbf16, #tpu.memory_space<vmem>>, %arg5: memref<1x128xf32, #tpu.memory_space<vmem>>, %arg6: memref<8x128xf32, #tpu.memory_space<vmem>>) attributes {dimension_semantics = [#tpu.dimension_semantics<parallel>], iteration_bounds = array<i64: 2>, scalar_prefetch = 0 : i64, scratch_operands = 0 : i64, tpu.core_type = #tpu.core_type<tc>, window_params = [{transform_indices = @transform_0, window_bounds = array<i64: 8, 128>}, {pipeline_mode = #tpu.pipeline_mode<synchronous>, transform_indices = @transform_1, window_bounds = array<i64: 128, 256>}, {pipeline_mode = #tpu.pipeline_mode<synchronous>, transform_indices = @transform_2, window_bounds = array<i64: 1, 256>}, {pipeline_mode = #tpu.pipeline_mode<synchronous>, transform_indices = @transform_3, window_bounds = array<i64: 256, 128>}, {pipeline_mode = #tpu.pipeline_mode<synchronous>, transform_indices = @transform_4, window_bounds = array<i64: 1, 128>}, {transform_indices = @transform_5, window_bounds = array<i64: 8, 128>}]} {
    %c0 = arith.constant 0 : index
    %c0_0 = arith.constant 0 : index
    %0 = vector.load %arg1[%c0, %c0_0] : memref<8x128xf32, #tpu.memory_space<vmem>>, vector<8x128xf32>
    %1 = arith.truncf %0 : vector<8x128xf32> to vector<8x128xbf16>
    %c0_1 = arith.constant 0 : index
    %c0_2 = arith.constant 0 : index
    %2 = vector.load %arg2[%c0_1, %c0_2] : memref<128x256xbf16, #tpu.memory_space<vmem>>, vector<128x128xbf16>
    %cst = arith.constant dense<0.000000e+00> : vector<8x128xf32>
    %3 = tpu.matmul %1, %2, %cst {dimension_numbers = #tpu.dot_dimension_numbers<[1], [0], [0], [1], [0, 0, 1, 1], [], []>} : vector<8x128xbf16>, vector<128x128xbf16>, vector<8x128xf32> -> vector<8x128xf32>
    %c0_3 = arith.constant 0 : index
    %c0_4 = arith.constant 0 : index
    %4 = vector.load %arg3[%c0_3, %c0_4] : memref<1x256xf32, #tpu.memory_space<vmem>>, vector<1x128xf32>
    %5 = vector.broadcast %4 : vector<1x128xf32> to vector<8x128xf32>
    %6 = arith.addf %3, %5 : vector<8x128xf32>
    %cst_5 = arith.constant 5.000000e-01 : f32
    %7 = vector.broadcast %cst_5 : f32 to vector<8x128xf32>
    %8 = arith.mulf %7, %6 : vector<8x128xf32>
    %cst_6 = arith.constant 0.707106769 : f32
    %9 = vector.broadcast %cst_6 : f32 to vector<8x128xf32>
    %10 = arith.mulf %6, %9 : vector<8x128xf32>
    %11 = math.erf %10 : vector<8x128xf32>
    %cst_7 = arith.constant 1.000000e+00 : f32
    %12 = vector.broadcast %cst_7 : f32 to vector<8x128xf32>
    %13 = arith.addf %12, %11 : vector<8x128xf32>
    %14 = arith.mulf %8, %13 : vector<8x128xf32>
    %15 = arith.truncf %14 : vector<8x128xf32> to vector<8x128xbf16>
    %c0_8 = arith.constant 0 : index
    %c0_9 = arith.constant 0 : index
    %16 = vector.load %arg4[%c0_8, %c0_9] : memref<256x128xbf16, #tpu.memory_space<vmem>>, vector<128x128xbf16>
    %cst_10 = arith.constant dense<0.000000e+00> : vector<8x128xf32>
    %17 = tpu.matmul %15, %16, %cst_10 {dimension_numbers = #tpu.dot_dimension_numbers<[1], [0], [0], [1], [0, 0, 1, 1], [], []>} : vector<8x128xbf16>, vector<128x128xbf16>, vector<8x128xf32> -> vector<8x128xf32>
    %c0_11 = arith.constant 0 : index
    %c128 = arith.constant 128 : index
    %18 = vector.load %arg2[%c0_11, %c128] : memref<128x256xbf16, #tpu.memory_space<vmem>>, vector<128x128xbf16>
    %cst_12 = arith.constant dense<0.000000e+00> : vector<8x128xf32>
    %19 = tpu.matmul %1, %18, %cst_12 {dimension_numbers = #tpu.dot_dimension_numbers<[1], [0], [0], [1], [0, 0, 1, 1], [], []>} : vector<8x128xbf16>, vector<128x128xbf16>, vector<8x128xf32> -> vector<8x128xf32>
    %c0_13 = arith.constant 0 : index
    %c128_14 = arith.constant 128 : index
    %20 = vector.load %arg3[%c0_13, %c128_14] : memref<1x256xf32, #tpu.memory_space<vmem>>, vector<1x128xf32>
    %21 = vector.broadcast %20 : vector<1x128xf32> to vector<8x128xf32>
    %22 = arith.addf %19, %21 : vector<8x128xf32>
    %cst_15 = arith.constant 5.000000e-01 : f32
    %23 = vector.broadcast %cst_15 : f32 to vector<8x128xf32>
    %24 = arith.mulf %23, %22 : vector<8x128xf32>
    %cst_16 = arith.constant 0.707106769 : f32
    %25 = vector.broadcast %cst_16 : f32 to vector<8x128xf32>
    %26 = arith.mulf %22, %25 : vector<8x128xf32>
    %27 = math.erf %26 : vector<8x128xf32>
    %cst_17 = arith.constant 1.000000e+00 : f32
    %28 = vector.broadcast %cst_17 : f32 to vector<8x128xf32>
    %29 = arith.addf %28, %27 : vector<8x128xf32>
    %30 = arith.mulf %24, %29 : vector<8x128xf32>
    %31 = arith.truncf %30 : vector<8x128xf32> to vector<8x128xbf16>
    %c128_18 = arith.constant 128 : index
    %c0_19 = arith.constant 0 : index
    %32 = vector.load %arg4[%c128_18, %c0_19] : memref<256x128xbf16, #tpu.memory_space<vmem>>, vector<128x128xbf16>
    %cst_20 = arith.constant dense<0.000000e+00> : vector<8x128xf32>
    %33 = tpu.matmul %31, %32, %cst_20 {dimension_numbers = #tpu.dot_dimension_numbers<[1], [0], [0], [1], [0, 0, 1, 1], [], []>} : vector<8x128xbf16>, vector<128x128xbf16>, vector<8x128xf32> -> vector<8x128xf32>
    %34 = arith.addf %17, %33 : vector<8x128xf32>
    %c0_21 = arith.constant 0 : index
    %c0_22 = arith.constant 0 : index
    %35 = vector.load %arg5[%c0_21, %c0_22] : memref<1x128xf32, #tpu.memory_space<vmem>>, vector<1x128xf32>
    %36 = vector.broadcast %35 : vector<1x128xf32> to vector<8x128xf32>
    %37 = arith.addf %34, %36 : vector<8x128xf32>
    %c0_23 = arith.constant 0 : index
    %c0_24 = arith.constant 0 : index
    %38 = vector.load %arg6[%c0_23, %c0_24] : memref<8x128xf32, #tpu.memory_space<vmem>>, vector<8x128xf32>
    tpu.vector_store %arg6[%c0_23, %c0_24], %37 {strides = array<i32>} : memref<8x128xf32, #tpu.memory_space<vmem>>, vector<8x128xf32>,
    return
  }
  func.func @transform_0(%arg0: i32) -> (i32, i32) {
    %c0_i32 = arith.constant 0 : i32
    %c0_i32_0 = arith.constant 0 : i32
    return %arg0, %c0_i32 : i32, i32
  }
  func.func @transform_1(%arg0: i32) -> (i32, i32) {
    %c0_i32 = arith.constant 0 : i32
    %c0_i32_0 = arith.constant 0 : i32
    %c0_i32_1 = arith.constant 0 : i32
    return %c0_i32, %c0_i32_0 : i32, i32
  }
  func.func @transform_2(%arg0: i32) -> (i32, i32) {
    %c0_i32 = arith.constant 0 : i32
    %c0_i32_0 = arith.constant 0 : i32
    %c0_i32_1 = arith.constant 0 : i32
    return %c0_i32, %c0_i32_0 : i32, i32
  }
  func.func @transform_3(%arg0: i32) -> (i32, i32) {
    %c0_i32 = arith.constant 0 : i32
    %c0_i32_0 = arith.constant 0 : i32
    %c0_i32_1 = arith.constant 0 : i32
    return %c0_i32, %c0_i32_0 : i32, i32
  }
  func.func @transform_4(%arg0: i32) -> (i32, i32) {
    %c0_i32 = arith.constant 0 : i32
    %c0_i32_0 = arith.constant 0 : i32
    %c0_i32_1 = arith.constant 0 : i32
    return %c0_i32, %c0_i32_0 : i32, i32
  }
  func.func @transform_5(%arg0: i32) -> (i32, i32) {
    %c0_i32 = arith.constant 0 : i32
    %c0_i32_0 = arith.constant 0 : i32
    return %arg0, %c0_i32 : i32, i32
  }
}

</mosaic_0001>

<bundles_post_ra>
// kernel: tpu_custom_call.1
= control target key start
LH: loop header
LB: loop body
LE: loop exit
PB: predicated region body
PF: predicated region fallthrough
CT: control target
= control target key end

     0   :  { %10 = vsyncpa [#allocation3], 0  ;;  %s1585_s0 = inlined_call_operand.hbm [shape: f32[16,128], index: 0, kind: input, shape index: {}]   ;;  %s1586_s1 = inlined_call_operand.hbm [shape: bf16[128,256], index: 1, kind: input, shape index: {}]   ;;  %s1587_s2 = inlined_call_operand.vmem [shape: f32[1,256], index: 2, kind: input, shape index: {}]   ;;  %s1588_s3 = inlined_call_operand.hbm [shape: bf16[256,128], index: 3, kind: input, shape index: {}]   ;;  %s1589_s4 = inlined_call_operand.vmem [shape: f32[1,128], index: 4, kind: input, shape index: {}]   ;;  %s1590_s5 = inlined_call_operand.hbm [shape: f32[16,128], index: 5, kind: output, shape index: {}]  }
   0x1   :  { %12 = vsyncpa [#allocation3 + $0x1], 0 }
   0x2   :  { %13 = vsyncpa [#allocation6], 0 }
   0x3   :  { %14 = vsyncpa [#allocation4], 0 }
   0x4   :  { %16 = vsyncpa [#allocation4 + $0x1], 0  ;;  %s1300_s18 = smov 0   ;;  %s1302_s19 = smov 0  }
   0x5   :  { %s1304_s20 = smov 0   ;;  %s1306_s21 = smov 0  }
   0x6 LB: > { %s1321_s22 = sadd.s32 4294967295, %s1258_s21   ;;  %s826_s23 = sadd.s32 4294967294, %s1258_s21   ;;  %s1258_s21 = sphi %s1306_s21, %s1610_s21   ;;  %s1254_s20 = sphi %s1304_s20, %s1609_s20   ;;  %s1250_s19 = sphi %s1302_s19, %s1608_s19   ;;  %s1246_s18 = sphi %s1300_s18, %s1607_s18  }
   0x7   : > { %p42_p0 = scmp.ne.s32.totalorder %s1250_s19, %s1246_s18  ;;  %p1591_p1 = scmp.eq.s32.totalorder %s1321_s22, 0 }
   0x8   : > { %p156_p3 = scmp.eq.s32.totalorder %s826_s23, 1  ;;  %p827_p5 = scmp.ge.s32.totalorder %s1258_s21, 1 }
   0x9   : > { %p1330_p4 = por %p1591_p1, %p42_p0  ;;  %p163_p7 = scmp.lt.s32.totalorder %s1258_s21, 3 }
   0xa   : > { %p1335_p6 = por %p156_p3, %p42_p0  ;;  %s1260_s27 = smov [#allocation5]  }
   0xb   : > { %s1594_s24 = scalar_select %p1330_p4, 1, 0 }
   0xc   : > { %s1595_s25 = scalar_select %p1335_p6, 1, 0 }
   0xd   : > { %p1340_p8 = pnand %p827_p5, %p163_p7  ;;  %s175_s28 = sshll.u32 %s1260_s27, 4  ;;  %s1344_s28 = int_to_ptr.vmem [resolvable:$true] %s175_s28 }
   0xe   : > { %s1261_s30 = smov [#allocation7]   ;;  %s1102_s9 = scalar_lea.hbm %s1586_s1, 2048 }
   0xf   : > { %p1005_p9 = pneg %p1340_p8  ;;  %s191_s6 = sshll.u32 %s1261_s30, 4  ;;  %s1355_s6 = int_to_ptr.vmem [resolvable:$true] %s191_s6 }
  0x10   : > { %p1103_p12 = scmp.ne.s32.totalorder %s1586_s1, %s1102_s9  ;;  %p1109_p5 = scmp.lt.u32.totalorder %s1102_s9, %s1586_s1 }
  0x11   : > { %p1351_p11 = pnand %p1005_p9, %p1591_p1 }
  0x13   : > { %p1104_p13 = pneg %p1351_p11 }
  0x15   : > { %p1105_p0 = pnand %p1104_p13, %p1103_p12 }
  0x17   : > { %p1106_p3 = pneg %p1105_p0 }
  0x19   : > { %p1111_p7 = pnand %p1109_p5, %p1106_p3 }
  0x1b   : > { %1114 = shalt.err (!%p1111_p7)
}
  0x1c   : > { %s1115_s14 = scalar_lea.vmem %s1344_s28, 2048  ;;  %p1123_p2 = scmp.lt.s32.totalorder %s1344_s28, %s1344_s28 }
  0x1d   : > { %p1116_p9 = scmp.ne.s32.totalorder %s1344_s28, %s1115_s14  ;;  %p1124_p12 = scmp.lt.s32.totalorder %s1115_s14, %s1115_s14 }
  0x1f   : > { %p1118_p10 = pnand %p1116_p9, %p1104_p13  ;;  %p1125_p0 = por %p1124_p12, %p1123_p2 }
  0x21   : > { %p1119_p1 = pneg %p1118_p10 }
  0x23   : > { %p1126_p6 = pnand %p1125_p0, %p1119_p1 }
  0x25   : > { %1129 = shalt.err (!%p1126_p6)
}
  0x26   : > { %s1262_s15 = smov 128   ;;  %s1263_s16 = smov 8  }
  0x27   : > { %1008 = dma.hbm_to_vmem [thread:$0]  (!%p1351_p11), %s1586_s1, 2048, %s1344_s28, [#allocation6], %s1262_s15, %s1262_s15, %s1263_s16  }
  0x28   : > { %s1130_s7 = scalar_lea.hbm %s1588_s3, 2048 }
  0x29   : > { %p1131_p2 = scmp.ne.s32.totalorder %s1588_s3, %s1130_s7  ;;  %p1137_p10 = scmp.lt.u32.totalorder %s1130_s7, %s1588_s3 }
  0x2b   : > { %p1133_p1 = pnand %p1131_p2, %p1104_p13 }
  0x2d   : > { %p1134_p6 = pneg %p1133_p1 }
  0x2f   : > { %p1139_p3 = pnand %p1137_p10, %p1134_p6 }
  0x31   : > { %1142 = shalt.err (!%p1139_p3)
}
  0x32   : > { %s1143_s28 = scalar_lea.vmem %s1355_s6, 2048  ;;  %p1151_p12 = scmp.lt.s32.totalorder %s1355_s6, %s1355_s6 }
  0x33   : > { %p1144_p5 = scmp.ne.s32.totalorder %s1355_s6, %s1143_s28  ;;  %p1152_p0 = scmp.lt.s32.totalorder %s1143_s28, %s1143_s28 }
  0x35   : > { %p1146_p7 = pnand %p1144_p5, %p1104_p13  ;;  %p1153_p2 = por %p1152_p0, %p1151_p12 }
  0x37   : > { %p1147_p9 = pneg %p1146_p7 }
  0x39   : > { %p1154_p1 = pnand %p1153_p2, %p1147_p9 }
  0x3b   : > { %1157 = shalt.err (!%p1154_p1)
}
  0x3c   : > { %s1264_s12 = smov 64   ;;  %s1265_s13 = smov 4  }
  0x3d   : > { %1011 = dma.hbm_to_vmem [thread:$0]  (!%p1351_p11), %s1588_s3, 2048, %s1355_s6, [#allocation6], %s1264_s12, %s1264_s12, %s1265_s13  }
  0x3e   : > { %s1410_s16 = sadd.s32 1, %s1258_s21   ;;  %s29_s23 = sadd.s32 1, %s1254_s20 }
  0x3f   : > { %s26_s17 = ssub.s32 %s1258_s21, %s1410_s16  ;;  %p36_p6 = scmp.ne.s32.totalorder %s1254_s20, %s1250_s19 }
  0x40   : > { %p27_p13 = scmp.eq.s32.totalorder %s26_s17, 0  ;;  %p37_p10 = scmp.eq.s32.totalorder %s1258_s21, 0 }
  0x41   : > { %p1598_p5 = scmp.eq.s32.totalorder %s1321_s22, 1  ;;  %p1022_p9 = scmp.lt.s32.totalorder %s1258_s21, 2 }
  0x42   : > { %s1419_s27 = scalar_select %p27_p13, %s1254_s20, %s29_s23  }
  0x43   : > { %p38_p3 = por %p37_p10, %p36_p6  ;;  %p1423_p7 = por %p1598_p5, %p36_p6 }
  0x44   : > { %s208_s29 = sand.u32 1, %s1254_s20   ;;  %s832_s6 = sshll.u32 %s1258_s21, 7 }
  0x45   : > { %s1599_s30 = scalar_select %p1423_p7, 1, 0 }
  0x46   : > { %s831_s7 = sshll.u32 %s208_s29, 3  ;;  %s1433_s10 = scalar_lea.hbm %s1585_s0, %s832_s6 }
  0x47   : > { %s212_s11 = scalar_lea.vmem [#allocation2], %s831_s7  ;;  %p1437_p11 = pnand %p1022_p9, %p38_p3 }
  0x48   : > { %s219_s28 = sshll.u32 %s212_s11, 4  ;;  %s209_s13 = scalar_lea.sflag [#allocation3], %s208_s29  ;;  %s1435_s28 = int_to_ptr.vmem [resolvable:$true] %s219_s28 }
  0x49   : > { %s1158_s14 = scalar_lea.hbm %s1433_s10, 128  ;;  %p1160_p0 = pneg %p1437_p11 }
  0x4a   : > { %p1159_p12 = scmp.ne.s32.totalorder %s1433_s10, %s1158_s14  ;;  %s1163_s23 = scalar_lea.hbm %s1585_s0, 256 }
  0x4b   : > { %p1164_p13 = scmp.lt.u32.totalorder %s1433_s10, %s1585_s0  ;;  %p1165_p6 = scmp.lt.u32.totalorder %s1163_s23, %s1158_s14 }
  0x4c   : > { %p1161_p2 = pnand %p1160_p0, %p1159_p12  ;;  %p1167_p3 = scmp.lt.u32.totalorder %s1158_s14, %s1433_s10 }
  0x4d   : > { %p1166_p10 = por %p1165_p6, %p1164_p13 }
  0x4e   : > { %p1162_p1 = pneg %p1161_p2 }
  0x4f   : > { %p1168_p5 = por %p1167_p3, %p1166_p10 }
  0x51   : > { %p1169_p9 = pnand %p1168_p5, %p1162_p1 }
  0x53   : > { %1172 = shalt.err (!%p1169_p9)
}
  0x54   : > { %s1173_s29 = scalar_lea.vmem %s1435_s28, 128  ;;  %s1266_s8 = smov [#allocation2]  }
  0x55   : > { %p1174_p12 = scmp.ne.s32.totalorder %s1435_s28, %s1173_s29  ;;  %s1178_s9 = sshll.u32 %s1266_s8, 4  ;;  %s1179_s9 = int_to_ptr.vmem [resolvable:$false] %s1178_s9 }
  0x56   : > { %s1180_s11 = scalar_lea.vmem %s1179_s9, 256  ;;  %p1181_p4 = scmp.lt.s32.totalorder %s1435_s28, %s1179_s9 }
  0x57   : > { %p1176_p2 = pnand %p1174_p12, %p1160_p0  ;;  %p1182_p13 = scmp.lt.s32.totalorder %s1180_s11, %s1173_s29 }
  0x59   : > { %p1177_p7 = pneg %p1176_p2  ;;  %p1183_p6 = por %p1182_p13, %p1181_p4 }
  0x5b   : > { %p1184_p10 = pnand %p1183_p6, %p1177_p7 }
  0x5d   : > { %1187 = shalt.err (!%p1184_p10)
}
  0x5e   : > { %1015 = dma.hbm_to_vmem [thread:$0]  (!%p1437_p11), %s1433_s10, 128, %s1435_s28, %s209_s13  }
  0x5f   : > { %228 = sbr.rel (%p1340_p8) target bundleno = 604 (0x25c), region = 40  ;;  %s1469_s14 = sand.u32 (!%p1340_p8), 1, %s1250_s19  }
  0x60   : > { %s834_s15 = sshll.u32 (!%p1340_p8), %s1469_s14, 3  ;;  %s231_s17 = scalar_lea.sflag (!%p1340_p8), [#allocation3], %s1469_s14 }
  0x61   : > { %s1475_s23 = scalar_lea.vmem (!%p1340_p8), [#allocation2], %s834_s15  ;;  %p1601_p4 = scmp.ne.s32.totalorder (!%p1340_p8), %s1594_s24, 0 }
  0x66   : > { %1233 = dma.done.wait (%p1601_p4), %s231_s17, 128  }
  0x67   : > { %1235 = vsyncadd (%p1601_p4), %s231_s17, 4294967168  ;;  %p1602_p7 = scmp.eq.s32.totalorder %s1321_s22, 0 }
  0x69   : > { %1237 = dma.done.wait (%p1602_p7), [#allocation6], 4096   ;;  %p1603_p8 = pmov %p1602_p7 }
  0x6a   : > { %v1267_v0 = vmov 0.0   ;;  %vm1268_vm0 = vmmov 0   ;;  %v1066_v1 = vld [vmem:[#allocation5] ss:$8 sps:$4 sm:$0xff]   ;;  %v1067_v2 = vld [vmem:[#allocation5 + $0x4] ss:$8 sps:$4 sm:$0xff]  }
  0x6b   : > { %1239 = vsyncadd (%p1603_p8), [#allocation6], 4294963200  ;;  %913 = vmatprep.subr.bf16.mxu0 %v1267_v0  ;;  %933 = vmatprep.subr.bf16.mxu1 %v1267_v0  ;;  %v1068_v3 = vld [vmem:[#allocation5 + $0x10] ss:$8 sps:$4 sm:$0xff]   ;;  %v1069_v4 = vld [vmem:[#allocation5 + $0x14] ss:$8 sps:$4 sm:$0xff]  }
  0x6c   : > { %929 = vmatprep.mubr.msk.bf16.mxu0 %vm1268_vm0, %v1267_v0  ;;  %949 = vmatprep.mubr.msk.bf16.mxu1 %vm1268_vm0, %v1267_v0  ;;  %v1070_v5 = vld [vmem:[#allocation5 + $0x20] ss:$8 sps:$4 sm:$0xff]   ;;  %v1071_v6 = vld [vmem:[#allocation5 + $0x24] ss:$8 sps:$4 sm:$0xff]   ;;  %v1072_v7 = vld [vmem:[#allocation5 + $0x30] ss:$8 sps:$4 sm:$0xff]  }
  0x6d   : > { %914 = vmatpush3.bf16.msra.mxu0 %v1066_v1  ;;  %934 = vmatpush3.bf16.msra.mxu1 %v1067_v2  ;;  %v1073_v8 = vld [vmem:[#allocation5 + $0x34] ss:$8 sps:$4 sm:$0xff]   ;;  %v1074_v9 = vld [vmem:[#allocation5 + $0x40] ss:$8 sps:$4 sm:$0xff]   ;;  %v1075_v10 = vld [vmem:[#allocation5 + $0x44] ss:$8 sps:$4 sm:$0xff]  }
  0x6e   : > { %915 = vmatprep.subr.bf16.mxu0 %v1267_v0  ;;  %935 = vmatprep.subr.bf16.mxu1 %v1267_v0  ;;  %v1076_v11 = vld [vmem:[#allocation5 + $0x50] ss:$8 sps:$4 sm:$0xff]   ;;  %v1077_v12 = vld [vmem:[#allocation5 + $0x54] ss:$8 sps:$4 sm:$0xff]   ;;  %v1078_v13 = vld [vmem:[#allocation5 + $0x60] ss:$8 sps:$4 sm:$0xff]  }
  0x6f   : > { %v1079_v14 = vld [vmem:[#allocation5 + $0x64] ss:$8 sps:$4 sm:$0xff]   ;;  %v1080_v15 = vld [vmem:[#allocation5 + $0x70] ss:$8 sps:$4 sm:$0xff]   ;;  %v1081_v17 = vld [vmem:[#allocation5 + $0x74] ss:$8 sps:$4 sm:$0xff]  }
  0x70   : > { %v270_v16 = vld [vmem:[%s1475_s23] sm:$0xff]  ;;  %v1082_v19 = vld [vmem:[#allocation7 + $0x40] sm:$0xff]   ;;  %v1084_v21 = vld [vmem:[#allocation7 + $0x48] sm:$0xff]   ;;  %s874_s7 = sshll.u32 %s1321_s22, 7  ;;  %s268_s6 = scalar_lea.vmem [#allocation8], %s834_s15 }
  0x71   : > { %916 = vmatpush3.bf16.msra.mxu0 %v1068_v3  ;;  %936 = vmatpush3.bf16.msra.mxu1 %v1069_v4  ;;  %v271_v18 = vpack.c.bf16 %v270_v16, %v270_v16  ;;  %v1083_v20 = vld [vmem:[#allocation7] sm:$0xff]   ;;  %v1085_v22 = vld [vmem:[#allocation7 + $0x8] sm:$0xff]   ;;  %v1086_v23 = vld [vmem:[#allocation7 + $0x50] sm:$0xff]   ;;  %s737_s29 = sshll.u32 %s268_s6, 4  ;;  %s1541_s11 = scalar_lea.hbm %s1590_s5, %s874_s7  ;;  %s1543_s29 = int_to_ptr.vmem [resolvable:$true] %s737_s29 }
  0x72   : > { %917 = vmatprep.subr.bf16.mxu0 %v1267_v0  ;;  %937 = vmatprep.subr.bf16.mxu1 %v1267_v0  ;;  %v1087_v24 = vld [vmem:[#allocation7 + $0x10] sm:$0xff]   ;;  %v1088_v25 = vld [vmem:[#allocation7 + $0x58] sm:$0xff]   ;;  %v1090_v27 = vld [vmem:[#allocation7 + $0x60] sm:$0xff]   ;;  %s724_s22 = scalar_lea.sflag [#allocation4], %s1469_s14  ;;  %s1188_s15 = scalar_lea.vmem %s1543_s29, 128 }
  0x73   : > { %v1089_v26 = vld [vmem:[#allocation7 + $0x18] sm:$0xff]   ;;  %v1091_v28 = vld [vmem:[#allocation7 + $0x20] sm:$0xff]   ;;  %v1092_v29 = vld [vmem:[#allocation7 + $0x68] sm:$0xff]   ;;  %p1189_p11 = scmp.ne.s32.totalorder %s1543_s29, %s1188_s15  ;;  %p1604_p0 = scmp.ne.s32.totalorder %s1599_s30, 0 }
  0x74   : > { %v1093_v30 = vld [vmem:[#allocation7 + $0x28] sm:$0xff]   ;;  %v1094_v31 = vld [vmem:[#allocation7 + $0x70] sm:$0xff]   ;;  %v1096_v33 = vld [vmem:[#allocation7 + $0x78] sm:$0xff]   ;;  %s1269_s17 = smov [#allocation8]  }
  0x75   : > { %918 = vmatpush3.bf16.msra.mxu0 %v1070_v5  ;;  %938 = vmatpush3.bf16.msra.mxu1 %v1071_v6  ;;  %v1095_v32 = vld [vmem:[#allocation7 + $0x30] sm:$0xff]   ;;  %v1097_v34 = vld [vmem:[#allocation7 + $0x38] sm:$0xff]   ;;  %p1190_p1 = pnand %p1189_p11, %p1604_p0  ;;  %s1192_s23 = sshll.u32 %s1269_s17, 4  ;;  %s1193_s23 = int_to_ptr.vmem [resolvable:$false] %s1192_s23 }
  0x76   : > { %919 = vmatprep.subr.bf16.mxu0 %v1267_v0  ;;  %939 = vmatprep.subr.bf16.mxu1 %v1267_v0  ;;  %v838_v35 = vld [vmem:[%s1587_s2] ss:$0 sm:$0xff]  ;;  %v847_v36 = vld [vmem:[%s1587_s2 + $0x1] ss:$0 sm:$0xff]  ;;  %s1194_s24 = scalar_lea.vmem %s1193_s23, 256  ;;  %p1195_p5 = scmp.lt.s32.totalorder %s1543_s29, %s1193_s23 }
  0x77   : > { %v872_v61 = vld [vmem:[%s1589_s4] ss:$0 sm:$0xff]  ;;  %p1191_p3 = pneg %p1190_p1  ;;  %p1196_p9 = scmp.lt.s32.totalorder %s1194_s24, %s1188_s15 }
  0x79   : > { %920 = vmatpush3.bf16.msra.mxu0 %v1072_v7  ;;  %940 = vmatpush3.bf16.msra.mxu1 %v1073_v8  ;;  %p1197_p12 = por %p1196_p9, %p1195_p5 }
  0x7a   : > { %921 = vmatprep.subr.bf16.mxu0 %v1267_v0  ;;  %941 = vmatprep.subr.bf16.mxu1 %v1267_v0 }
  0x7b   : > { %p1198_p2 = pnand %p1197_p12, %p1191_p3 }
  0x7d   : > { %922 = vmatpush3.bf16.msra.mxu0 %v1074_v9  ;;  %942 = vmatpush3.bf16.msra.mxu1 %v1075_v10 }
  0x7e   : > { %923 = vmatprep.subr.bf16.mxu0 %v1267_v0  ;;  %943 = vmatprep.subr.bf16.mxu1 %v1267_v0 }
  0x81   : > { %924 = vmatpush3.bf16.msra.mxu0 %v1076_v11  ;;  %944 = vmatpush3.bf16.msra.mxu1 %v1077_v12 }
  0x82   : > { %925 = vmatprep.subr.bf16.mxu0 %v1267_v0  ;;  %945 = vmatprep.subr.bf16.mxu1 %v1267_v0 }
  0x85   : > { %926 = vmatpush3.bf16.msra.mxu0 %v1078_v13  ;;  %946 = vmatpush3.bf16.msra.mxu1 %v1079_v14 }
  0x86   : > { %927 = vmatprep.subr.bf16.mxu0 %v1267_v0  ;;  %947 = vmatprep.subr.bf16.mxu1 %v1267_v0 }
  0x89   : > { %928 = vmatpush3.bf16.msra.mxu0 %v1080_v15  ;;  %948 = vmatpush3.bf16.msra.mxu1 %v1081_v17 }
  0x8a   : > { %953 = vmatprep.subr.bf16.mxu0 %v1267_v0  ;;  %973 = vmatprep.subr.bf16.mxu1 %v1267_v0 }
  0x8c   : > { %930 = vmatmul.mubr.bf16.vlgmr.msra.gmra.mrb[0].mxu0 %v271_v18  ;;  %950 = vmatmul.mubr.bf16.vlgmr.msra.gmra.mrb[0].mxu1 %v271_v18 }
  0x8d   : > { %954 = vmatpush3.bf16.msra.mxu0 %v1082_v19  ;;  %974 = vmatpush3.bf16.msra.mxu1 %v1083_v20 }
  0x8e   : > { %955 = vmatprep.subr.bf16.mxu0 %v1267_v0  ;;  %975 = vmatprep.subr.bf16.mxu1 %v1267_v0 }
  0x8f   : > { %969 = vmatprep.mubr.msk.bf16.mxu0 %vm1268_vm0, %v1267_v0  ;;  %989 = vmatprep.mubr.msk.bf16.mxu1 %vm1268_vm0, %v1267_v0 }
  0x91   : > { %956 = vmatpush3.bf16.msra.mxu0 %v1084_v21  ;;  %976 = vmatpush3.bf16.msra.mxu1 %v1085_v22 }
  0x92   : > { %957 = vmatprep.subr.bf16.mxu0 %v1267_v0  ;;  %977 = vmatprep.subr.bf16.mxu1 %v1267_v0 }
  0x95   : > { %958 = vmatpush3.bf16.msra.mxu0 %v1086_v23  ;;  %978 = vmatpush3.bf16.msra.mxu1 %v1087_v24 }
  0x96   : > { %959 = vmatprep.subr.bf16.mxu0 %v1267_v0  ;;  %979 = vmatprep.subr.bf16.mxu1 %v1267_v0 }
  0x99   : > { %960 = vmatpush3.bf16.msra.mxu0 %v1088_v25  ;;  %980 = vmatpush3.bf16.msra.mxu1 %v1089_v26 }
  0x9a   : > { %961 = vmatprep.subr.bf16.mxu0 %v1267_v0  ;;  %981 = vmatprep.subr.bf16.mxu1 %v1267_v0 }
  0x9d   : > { %962 = vmatpush3.bf16.msra.mxu0 %v1090_v27  ;;  %982 = vmatpush3.bf16.msra.mxu1 %v1091_v28 }
  0x9e   : > { %963 = vmatprep.subr.bf16.mxu0 %v1267_v0  ;;  %983 = vmatprep.subr.bf16.mxu1 %v1267_v0 }
  0xa1   : > { %964 = vmatpush3.bf16.msra.mxu0 %v1092_v29  ;;  %984 = vmatpush3.bf16.msra.mxu1 %v1093_v30 }
  0xa2   : > { %965 = vmatprep.subr.bf16.mxu0 %v1267_v0  ;;  %985 = vmatprep.subr.bf16.mxu1 %v1267_v0 }
  0xa5   : > { %966 = vmatpush3.bf16.msra.mxu0 %v1094_v31  ;;  %986 = vmatpush3.bf16.msra.mxu1 %v1095_v32 }
  0xa6   : > { %967 = vmatprep.subr.bf16.mxu0 %v1267_v0  ;;  %987 = vmatprep.subr.bf16.mxu1 %v1267_v0 }
  0xa9   : > { %968 = vmatpush3.bf16.msra.mxu0 %v1096_v33  ;;  %988 = vmatpush3.bf16.msra.mxu1 %v1097_v34 }
 0x15f   : > { %v377_v37 = vpop.f32.mrb[0].mxu0  ;;  %v510_v39 = vpop.f32.mrb[0].mxu1 }
 0x160   : > { %v378_v38 = vadd.f32 %v838_v35, %v377_v37  ;;  %v931_v40 = vpop.f32.mrb[1].mxu0  ;;  %v511_v41 = vadd.f32 %v847_v36, %v510_v39  ;;  %v951_v42 = vpop.f32.mrb[1].mxu1 }
 0x161   : > { %v380_v43 = vpop.f32.mrb[2].mxu0  ;;  %v513_v45 = vpop.f32.mrb[2].mxu1 }
 0x162   : > { %v384_v44 = vmul.f32 0.70710677, %v378_v38  ;;  %v932_v46 = vpop.f32.mrb[3].mxu0  ;;  %v517_v47 = vmul.f32 0.70710677, %v511_v41  ;;  %v952_v48 = vpop.f32.mrb[3].mxu1 }
 0x163   : > { %v383_v51 = vmul.f32 0.5, %v378_v38  ;;  %v516_v53 = vmul.f32 0.5, %v511_v41 }
 0x164   : > { %1098 = verf.f32 %v384_v44 }
 0x165   : > { %1100 = verf.f32 %v517_v47 }
 0x16e   : > { %v1099_v49 = vpop.eup %1098 }
 0x16f   : > { %v1101_v50 = vpop.eup %1100  ;;  %v386_v52 = vadd.f32 1.0, %v1099_v49 }
 0x170   : > { %v519_v54 = vadd.f32 1.0, %v1101_v50 }
 0x171   : > { %v387_v55 = vmul.f32 %v386_v52, %v383_v51 }
 0x172   : > { %v520_v56 = vmul.f32 %v519_v54, %v516_v53 }
 0x173   : > { %v388_v57 = vpack.c.bf16 %v387_v55, %v387_v55 }
 0x174   : > { %v521_v58 = vpack.c.bf16 %v520_v56, %v520_v56 }
 0x175   : > { %990 = vmatmul.mubr.bf16.vlgmr.msra.gmra.mrb[4].mxu1 %v388_v57 }
 0x176   : > { %970 = vmatmul.mubr.bf16.vlgmr.msra.gmra.mrb[4].mxu0 %v521_v58 }
 0x248   : > { %v708_v59 = vpop.f32.mrb[4].mxu1 }
 0x249   : > { %v620_v60 = vpop.f32.mrb[4].mxu0  ;;  %v991_v62 = vpop.f32.mrb[5].mxu1 }
 0x24a   : > { %v709_v63 = vadd.f32 %v708_v59, %v620_v60  ;;  %v971_v0 = vpop.f32.mrb[5].mxu0  ;;  %v711_v1 = vpop.f32.mrb[6].mxu1 }
 0x24b   : > { %v623_v2 = vpop.f32.mrb[6].mxu0  ;;  %v992_v3 = vpop.f32.mrb[7].mxu1 }
 0x24c   : > { %v721_v4 = vadd.f32 %v872_v61, %v709_v63  ;;  %v972_v5 = vpop.f32.mrb[7].mxu0 }
 0x24e   : > { %722 = vst [vmem:[%s268_s6] sm:$0xff] %v721_v4 }
 0x24f   : > { %1201 = shalt.err (!%p1198_p2)
}
 0x250   : > { %s1202_s14 = scalar_lea.hbm %s1541_s11, 128  ;;  %s1206_s28 = scalar_lea.hbm %s1590_s5, 256 }
 0x251   : > { %p1203_p13 = scmp.ne.s32.totalorder %s1541_s11, %s1202_s14  ;;  %p1207_p4 = scmp.lt.u32.totalorder %s1541_s11, %s1590_s5 }
 0x252   : > { %p1208_p7 = scmp.lt.u32.totalorder %s1206_s28, %s1202_s14  ;;  %p1210_p11 = scmp.lt.u32.totalorder %s1202_s14, %s1541_s11 }
 0x253   : > { %p1204_p6 = pnand %p1203_p13, %p1604_p0 }
 0x254   : > { %p1209_p8 = por %p1208_p7, %p1207_p4 }
 0x255   : > { %p1205_p10 = pneg %p1204_p6 }
 0x256   : > { %p1211_p1 = por %p1210_p11, %p1209_p8 }
 0x258   : > { %p1212_p3 = pnand %p1211_p1, %p1205_p10 }
 0x25a   : > { %1215 = shalt.err (!%p1212_p3)
}
 0x25b   : > { %1003 = dma.vmem_to_hbm [thread:$0]  (%p1604_p0), %s1543_s29, 128, %s1541_s11, %s724_s22  }
 0x25c PF: > { %s749_s7 = sand.u32 1, %s1246_s18   ;;  %p1605_p5 = scmp.ne.s32.totalorder %s1595_s25, 0 }
 0x25d   : > { %p1606_p9 = scmp.ge.s32.totalorder %s1258_s21, 2  ;;  %s750_s6 = scalar_lea.sflag [#allocation4], %s749_s7 }
 0x25f   : > { %p1017_p12 = pnand %p1606_p9, %p1605_p5 }
 0x261   : > { %1241 = dma.done.wait (!%p1017_p12), %s750_s6, 128  }
 0x262   : > { %1243 = vsyncadd (!%p1017_p12), %s750_s6, 4294967168  ;;  %p19_p2 = scmp.ge.s32.totalorder %s1410_s16, 4   ;;  %s1607_s18 = smov %s1250_s19 }
 0x263   : > { %s1608_s19 = smov %s1254_s20  ;;  %s1609_s20 = smov %s1419_s27 }
 0x264   : > { %s1610_s21 = smov %s1410_s16  ;;  %21 = sbr.rel (!%p19_p2) target bundleno = 6 (0x6), region = 93 }
 0x26b   :  { %755 = vsyncpa [#allocation3], 1 }
 0x26c   :  { %757 = vsyncpa [#allocation3 + $0x1], 1 }
 0x26d   :  { %758 = vsyncpa [#allocation6], 1 }
 0x26e   :  { %759 = vsyncpa [#allocation4], 1 }
 0x26f   :  { %761 = vsyncpa [#allocation4 + $0x1], 1 }

</bundles_post_ra>
